<compile_context>
chip_gen: v5e
topology: v5e:2x2
jax: 0.10.0
libtpu: 0.0.40
codegen_flags: <defaults>
</compile_context>

<pallas_src>
import math

import jax
import jax.numpy as jnp
from jax.experimental import pallas as pl
from jax.experimental.pallas import tpu as pltpu


_LANE = 128
# ~2 MiB per block buffer: (in + out) x 2 pipeline buffers x 2 MiB = 8 MiB,
# comfortably under every generation's scoped-VMEM default.
_TARGET_BLOCK_BYTES = 2 * 1024 * 1024


def _sublane(dtype) -> int:
    """Minimum sublane multiple for dense vreg packing of this dtype."""
    itemsize = jnp.dtype(dtype).itemsize
    return max(8, 32 // max(itemsize, 1))  # 8 for f32, 16 for bf16, 32 for i8


def _make_deadzone_kernel(a: float):
    """Kernel with the (static) threshold closed over — no SMEM operand."""

    def kernel(x_ref, o_ref):
        x = x_ref[...]
        av = jnp.asarray(a, dtype=x.dtype)
        o_ref[...] = jnp.where(
            x > av, x - av, jnp.where(x < -av, x + av, jnp.zeros_like(x))
        )

    return kernel


def dead_zone_linear(x: jax.Array, a: float = 0.1) -> jax.Array:
    """Apply DeadZoneLinear elementwise to x (any shape, float dtype)."""
    orig_shape = x.shape
    dtype = x.dtype
    n = math.prod(orig_shape) if orig_shape else 1
    if n == 0:
        return x

    itemsize = jnp.dtype(dtype).itemsize
    sub = _sublane(dtype)

    # Pick a wide lane dimension that divides n exactly -> pure reshape, no
    # pad and no final slice (no extra HBM passes). Only fall back to padding
    # for ragged element counts.
    cols = None
    for cand in (2048, 1024, 512, 256, 128):
        if n % cand == 0:
            cols = cand
            break

    flat = x.reshape(-1)
    padded = False
    if cols is None:
        cols = _LANE
        rows = pl.cdiv(n, cols)
        flat = jnp.pad(flat, (0, rows * cols - n))
        padded = True
    else:
        rows = n // cols

    x2d = flat.reshape(rows, cols)

    # Block rows: aim for ~_TARGET_BLOCK_BYTES per block, rounded to the
    # dtype's sublane multiple; small arrays go in a single full-extent block.
    target_rows = max(sub, (_TARGET_BLOCK_BYTES // (cols * itemsize)) // sub * sub)
    if rows <= target_rows:
        tile_rows = rows                       # full-extent block (any size OK)
        grid = (1,)
    else:
        tile_rows = target_rows                # multiple of sublane
        grid = (pl.cdiv(rows, tile_rows),)     # partial last block is masked

    out2d = pl.pallas_call(
        _make_deadzone_kernel(a),
        out_shape=jax.ShapeDtypeStruct((rows, cols), dtype),
        grid=grid,
        in_specs=[pl.BlockSpec((tile_rows, cols), lambda i: (i, 0))],
        out_specs=pl.BlockSpec((tile_rows, cols), lambda i: (i, 0)),
        compiler_params=pltpu.CompilerParams(
            dimension_semantics=("parallel",)),
    )(x2d)

    out_flat = out2d.reshape(-1)
    if padded:
        out_flat = out_flat[:n]
    return out_flat.reshape(orig_shape)


def _reference(x, a):
    return jnp.where(x > a, x - a, jnp.where(x < -a, x + a, 0.0)).astype(x.dtype)


if __name__ == "__main__":
    key = jax.random.PRNGKey(0)
    a = 0.1

    # Small NCHW-like input, consistent with an activation module.
    x = jax.random.normal(key, (2, 4, 16, 16), dtype=jnp.float32)
    y = jax.block_until_ready(dead_zone_linear(x, a=a))
    assert y.shape == x.shape and y.dtype == x.dtype
    assert jnp.allclose(y, _reference(x, a), atol=1e-6), "mismatch vs reference"

    # Ragged size to exercise the (rare) pad fallback path.
    x2 = jax.random.normal(jax.random.PRNGKey(1), (3, 5, 7), dtype=jnp.float32)
    y2 = jax.block_until_ready(dead_zone_linear(x2, a=a))
    assert y2.shape == x2.shape and y2.dtype == x2.dtype
    assert jnp.allclose(y2, _reference(x2, a), atol=1e-6), "mismatch vs reference (ragged)"

    print("KERNEL_OK")
</pallas_src>

<mosaic_0001>
module attributes {stable_mosaic.version = 11 : i64} {
  func.func @kernel(%arg0: i32, %arg1: memref<1x2048xf32, #tpu.memory_space<vmem>>, %arg2: memref<1x2048xf32, #tpu.memory_space<vmem>>) attributes {dimension_semantics = [#tpu.dimension_semantics<parallel>], iteration_bounds = array<i64: 1>, scalar_prefetch = 0 : i64, scratch_operands = 0 : i64, tpu.core_type = #tpu.core_type<tc>, window_params = [{transform_indices = @transform_0, window_bounds = array<i64: 1, 2048>}, {transform_indices = @transform_1, window_bounds = array<i64: 1, 2048>}]} {
    %c0 = arith.constant 0 : index
    %c0_0 = arith.constant 0 : index
    %0 = vector.load %arg1[%c0, %c0_0] : memref<1x2048xf32, #tpu.memory_space<vmem>>, vector<1x2048xf32>
    %cst = arith.constant 1.000000e-01 : f32
    %1 = vector.broadcast %cst : f32 to vector<1x2048xf32>
    %2 = arith.cmpf ogt, %0, %1 : vector<1x2048xf32>
    %cst_1 = arith.constant 1.000000e-01 : f32
    %3 = vector.broadcast %cst_1 : f32 to vector<1x2048xf32>
    %4 = arith.subf %0, %3 : vector<1x2048xf32>
    %cst_2 = arith.constant 0.000000e+00 : f32
    %cst_3 = arith.constant 1.000000e-01 : f32
    %5 = arith.subf %cst_2, %cst_3 : f32
    %6 = vector.broadcast %5 : f32 to vector<1x2048xf32>
    %7 = arith.cmpf olt, %0, %6 : vector<1x2048xf32>
    %cst_4 = arith.constant 1.000000e-01 : f32
    %8 = vector.broadcast %cst_4 : f32 to vector<1x2048xf32>
    %9 = arith.addf %0, %8 : vector<1x2048xf32>
    %cst_5 = arith.constant 0.000000e+00 : f32
    %10 = vector.broadcast %cst_5 : f32 to vector<1x2048xf32>
    %11 = arith.select %7, %9, %10 : vector<1x2048xi1>, vector<1x2048xf32>
    %12 = arith.select %2, %4, %11 : vector<1x2048xi1>, vector<1x2048xf32>
    %c0_6 = arith.constant 0 : index
    %c0_7 = arith.constant 0 : index
    %13 = vector.load %arg2[%c0_6, %c0_7] : memref<1x2048xf32, #tpu.memory_space<vmem>>, vector<1x2048xf32>
    tpu.vector_store %arg2[%c0_6, %c0_7], %12 {strides = array<i32>} : memref<1x2048xf32, #tpu.memory_space<vmem>>, vector<1x2048xf32>,
    return
  }
  func.func @transform_0(%arg0: i32) -> (i32, i32) {
    %c0_i32 = arith.constant 0 : i32
    %c0_i32_0 = arith.constant 0 : i32
    return %arg0, %c0_i32 : i32, i32
  }
  func.func @transform_1(%arg0: i32) -> (i32, i32) {
    %c0_i32 = arith.constant 0 : i32
    %c0_i32_0 = arith.constant 0 : i32
    return %arg0, %c0_i32 : i32, i32
  }
}

</mosaic_0001>

<bundles_post_ra>
// kernel: tpu_custom_call.1
= control target key start
LH: loop header
LB: loop body
LE: loop exit
PB: predicated region body
PF: predicated region fallthrough
CT: control target
= control target key end

     0   :  { %6 = vsyncpa [#allocation3], 0  ;;  %s130_s0 = inlined_call_operand.hbm [shape: f32[1,2048], index: 0, kind: input, shape index: {}]   ;;  %s131_s1 = inlined_call_operand.hbm [shape: f32[1,2048], index: 1, kind: output, shape index: {}]  }
   0x1   :  { %7 = vsyncpa [#allocation4], 0  ;;  %s13_s8 = sshll.u32 %s130_s0, 4  ;;  %s112_s9 = smov [#allocation2]   ;;  %s14_s8 = int_to_ptr.hbm [resolvable:$true] %s13_s8 }
   0x2   :  { %s15_s10 = sshll.u32 %s112_s9, 4  ;;  %s16_s10 = int_to_ptr.vmem [resolvable:$true] %s15_s10 }
   0x3   :  { %18 = dma.hbm_to_vmem [thread:$0]  %s14_s8, 256, %s16_s10, [#allocation3]  }
   0x4   :  { %108 = dma.done.wait [#allocation3], 256  }
   0x5   :  { %109 = vsyncadd [#allocation3], 4294967040  ;;  %v23_v0 = vld [vmem:[#allocation2] sm:$0xff]  ;;  %v24_v1 = vld [vmem:[#allocation2 + $0x8] sm:$0xff]  ;;  %s113_s11 = smov [#allocation5]   ;;  %s46_s15 = sshll.u32 %s131_s1, 4  ;;  %s47_s15 = int_to_ptr.hbm [resolvable:$true] %s46_s15 }
   0x6   :  { %v56_v2 = vadd.f32 -0.1, %v23_v0  ;;  %vm29_vm0 = vcmp.lt.f32.partialorder %v23_v0, -0.1  ;;  %s44_s12 = sshll.u32 %s113_s11, 4  ;;  %s45_s12 = int_to_ptr.vmem [resolvable:$true] %s44_s12 }
   0x7   :  { %vm25_vm1 = vcmp.gt.f32.partialorder %v23_v0, 0.1  ;;  %v31_v3 = vadd.f32 0.1, %v23_v0  ;;  %v57_v4 = vadd.f32 -0.1, %v24_v1 }
   0x8   :  { %vm26_vm2 = vcmp.gt.f32.partialorder %v24_v1, 0.1  ;;  %vm30_vm3 = vcmp.lt.f32.partialorder %v24_v1, -0.1  ;;  %v32_v5 = vadd.f32 0.1, %v24_v1 }
   0x9   :  { %v33_v6 = vsel %vm29_vm0, %v31_v3, 0.0 }
   0xa   :  { %v35_v7 = vsel %vm25_vm1, %v56_v2, %v33_v6  ;;  %v34_v8 = vsel %vm30_vm3, %v32_v5, 0.0 }
   0xb   :  { %37 = vst [vmem:[#allocation5] sm:$0xff] %v35_v7  ;;  %v36_v9 = vsel %vm26_vm2, %v57_v4, %v34_v8 }
   0xc   :  { %38 = vst [vmem:[#allocation5 + $0x8] sm:$0xff] %v36_v9 }
   0xd   :  { %49 = dma.vmem_to_hbm [thread:$0]  %s45_s12, 256, %s47_s15, [#allocation4]  }
   0xe   :  { %110 = dma.done.wait [#allocation4], 256  }
   0xf   :  { %111 = vsyncadd [#allocation4], 4294967040 }
  0x10   :  { %54 = vsyncpa [#allocation3], 1 }
  0x11   :  { %55 = vsyncpa [#allocation4], 1 }

</bundles_post_ra>
